<compile_context>
chip_gen: v7x
topology: tpu7x:2x2x1
jax: 0.10.0
libtpu: 0.0.40
codegen_flags: <defaults>
</compile_context>

<pallas_src>
import functools

import jax
import jax.numpy as jnp
from jax.experimental import pallas as pl
from jax.experimental.pallas import tpu as pltpu


def _round_up(x, m):
    return (x + m - 1) // m * m


def _device_kind():
    try:
        return jax.devices()[0].device_kind.lower()
    except Exception:
        return ""


def _vmem_capacity_bytes():
    try:
        return int(pltpu.get_tpu_info().vmem_capacity_bytes)
    except Exception:
        kind = _device_kind()
        # v7x has 64 MiB per TensorCore; v5e/v6e have 128 MiB.
        return (64 if ("v7" in kind or "7x" in kind) else 128) * 1024 * 1024


def _pick_cout_tile(Cout):
    """256-wide output tile on v6e/v7x (256x256 MXU) when it adds no extra padding."""
    cp128 = _round_up(Cout, 128)
    kind = _device_kind()
    wide_mxu = any(t in kind for t in ("v6", "v7", "7x", "trillium"))
    if wide_mxu and cp128 % 256 == 0:
        return 256, cp128
    return 128, cp128


def _pick_h_tile(H, WP, K3, TCO, out_bytes, tile_budget_bytes):
    """Largest divisor of H whose per-step working set stays inside the budget."""
    best = 1
    for th in range(1, H + 1):
        if H % th:
            continue
        out_tile = th * WP * TCO * out_bytes * 2            # double-buffered output
        acc = th * WP * TCO * 4                             # f32 accumulator values
        lhs = 3 * th * WP * _round_up(K3, 128) * 2          # bf16 dy slices (lane-padded)
        if out_tile + acc + lhs <= tile_budget_bytes:
            best = th
    return best


def _conv3x3_kernel(x_ref, w_ref, b_ref, o_ref, *, TH, WP, K3):
    # x_ref: (1, H+2, WP, K3)  bf16, dx-expanded, channels-last
    # w_ref: (3, K3, TCO)      bf16, one (K3, TCO) slab per dy tap row
    # b_ref: (1, TCO)          f32 bias tile
    # o_ref: (1, TH*WP, TCO)   lane-dense output tile
    h0 = pl.multiple_of(pl.program_id(2) * TH, TH)

    # H slices are leading-dim slices (free); the (TH, WP, K3) -> (TH*WP, K3) collapse
    # is a free leading-dim merge because WP is sublane-aligned.
    lhs0 = x_ref[0, pl.ds(h0 + 0, TH), :, :].reshape(TH * WP, K3)
    lhs1 = x_ref[0, pl.ds(h0 + 1, TH), :, :].reshape(TH * WP, K3)
    lhs2 = x_ref[0, pl.ds(h0 + 2, TH), :, :].reshape(TH * WP, K3)

    # Pure value-chain accumulation: Mosaic fuses the adds with MXU result pops
    # (in-place MRB accumulation on v7x); no full-tile scratch load/store passes.
    acc = jnp.dot(lhs0, w_ref[0], preferred_element_type=jnp.float32)
    acc = acc + jnp.dot(lhs1, w_ref[1], preferred_element_type=jnp.float32)
    acc = acc + jnp.dot(lhs2, w_ref[2], preferred_element_type=jnp.float32)
    acc = acc + b_ref[...].astype(jnp.float32)               # bias folded into epilogue

    o_ref[0] = acc.astype(o_ref.dtype)


def conv3x3(x_nchw, weight_oihw, bias, *, compute_dtype=jnp.bfloat16):
    """Equivalent of Conv3x3.forward: zero-pad by 1 then 3x3 conv with bias.

    x_nchw:      (N, Cin, H, W)
    weight_oihw: (Cout, Cin, 3, 3)   (PyTorch layout)
    bias:        (Cout,)
    returns:     (N, Cout, H, W)
    """
    N, Cin, H, W = x_nchw.shape
    Cout = weight_oihw.shape[0]
    out_dtype = x_nchw.dtype

    TCO, Cout_p = _pick_cout_tile(Cout)
    K = 3 * Cin
    K3 = _round_up(K, 16)                 # bf16 sublane packing of the contraction dim
    WP = _round_up(W, 8)                  # sublane-aligned W (free reshape, unmasked stores)

    in_bytes = jnp.dtype(compute_dtype).itemsize
    out_bytes = jnp.dtype(out_dtype).itemsize

    cap = _vmem_capacity_bytes()
    budget = int(cap * 0.75)
    TH = _pick_h_tile(H, WP, K3, TCO, out_bytes, budget // 8)

    n_cout_tiles = Cout_p // TCO
    # Megacore (2 TCs on v7x): keep at least 2 grid steps so both cores get work.
    if N * n_cout_tiles * (H // TH) < 2 and TH % 2 == 0:
        TH //= 2

    # ---- XLA glue: layout conversion, zero padding, dx-expansion ----
    x = jnp.transpose(x_nchw, (0, 2, 3, 1)).astype(compute_dtype)        # (N, H, W, Cin)
    x = jnp.pad(x, ((0, 0), (1, 1), (1, 1 + (WP - W)), (0, 0)))          # (N, H+2, WP+2, Cin)
    x3 = jnp.concatenate(
        [x[:, :, 0:WP, :], x[:, :, 1:WP + 1, :], x[:, :, 2:WP + 2, :]], axis=-1
    )                                                                     # (N, H+2, WP, 3*Cin)
    x3 = jnp.pad(x3, ((0, 0), (0, 0), (0, 0), (0, K3 - K)))               # pad K once

    w = jnp.transpose(weight_oihw, (2, 3, 1, 0)).reshape(3, K, Cout)      # (3, 3*Cin, Cout)
    w = jnp.pad(w, ((0, 0), (0, K3 - K), (0, Cout_p - Cout))).astype(compute_dtype)

    b = jnp.pad(bias, (0, Cout_p - Cout)).reshape(1, Cout_p).astype(jnp.float32)

    # VMEM limit derived from the actual (double-buffered) block sizes, capped by
    # the generation's capacity.
    x_blk = (H + 2) * _round_up(WP, 16) * _round_up(K3, 128) * in_bytes
    w_blk = 3 * _round_up(K3, 16) * TCO * in_bytes
    o_blk = _round_up(TH * WP, 8) * TCO * out_bytes
    acc_blk = TH * WP * TCO * 4
    est = 2 * (x_blk + w_blk + o_blk) + acc_blk
    vmem_limit = int(min(budget, max(32 * 1024 * 1024, est * 3 // 2 + (4 << 20))))

    kernel = functools.partial(_conv3x3_kernel, TH=TH, WP=WP, K3=K3)

    out = pl.pallas_call(
        kernel,
        out_shape=jax.ShapeDtypeStruct((N, H * WP, Cout_p), out_dtype),
        grid_spec=pltpu.PrefetchScalarGridSpec(
            num_scalar_prefetch=0,
            # H innermost so the weight/bias blocks are invariant over it (no re-DMA).
            grid=(N, n_cout_tiles, H // TH),
            in_specs=[
                pl.BlockSpec((1, H + 2, WP, K3), lambda i, j, h: (i, 0, 0, 0)),
                pl.BlockSpec((3, K3, TCO), lambda i, j, h: (0, 0, j)),
                pl.BlockSpec((1, TCO), lambda i, j, h: (0, j)),
            ],
            out_specs=pl.BlockSpec((1, TH * WP, TCO), lambda i, j, h: (i, h, j)),
        ),
        compiler_params=pltpu.CompilerParams(
            dimension_semantics=("parallel", "parallel", "parallel"),
            vmem_limit_bytes=vmem_limit,
        ),
    )(x3, w, b)

    out = out.reshape(N, H, WP, Cout_p)[:, :, :W, :Cout]                  # drop W/Cout padding
    return jnp.transpose(out, (0, 3, 1, 2))                               # (N, Cout, H, W)


if __name__ == "__main__":
    key = jax.random.PRNGKey(0)
    kx, kw, kb = jax.random.split(key, 3)

    N, Cin, H, W = 2, 4, 16, 16
    Cout = 8

    x = jax.random.normal(kx, (N, Cin, H, W), dtype=jnp.float32)
    # Deterministic init mimicking PyTorch Conv2d default (uniform in +-1/sqrt(fan_in)).
    fan_in = Cin * 3 * 3
    bound = 1.0 / (fan_in ** 0.5)
    weight = jax.random.uniform(kw, (Cout, Cin, 3, 3), jnp.float32, -bound, bound)
    bias = jax.random.uniform(kb, (Cout,), jnp.float32, -bound, bound)

    out = jax.block_until_ready(conv3x3(x, weight, bias))
    assert out.shape == (N, Cout, H, W)

    # Reference with the same bf16-rounded operands (kernel uses bf16 x bf16 -> f32 MXU).
    xq = x.astype(jnp.bfloat16).astype(jnp.float32)
    wq = weight.astype(jnp.bfloat16).astype(jnp.float32)
    ref = jax.lax.conv_general_dilated(
        xq, wq, window_strides=(1, 1), padding=((1, 1), (1, 1)),
        dimension_numbers=("NCHW", "OIHW", "NCHW"),
    ) + bias[None, :, None, None]
    err = float(jnp.max(jnp.abs(out - ref)))
    assert jnp.allclose(out, ref, atol=2e-2, rtol=2e-2), err

    print("KERNEL_OK")
</pallas_src>

<mosaic_0001>
module attributes {stable_mosaic.version = 11 : i64} {
  func.func @_conv3x3_kernel(%arg0: i32, %arg1: i32, %arg2: i32, %arg3: memref<1x18x16x16xbf16, #tpu.memory_space<vmem>>, %arg4: memref<3x16x128xbf16, #tpu.memory_space<vmem>>, %arg5: memref<1x128xf32, #tpu.memory_space<vmem>>, %arg6: memref<1x256x128xf32, #tpu.memory_space<vmem>>) attributes {dimension_semantics = [#tpu.dimension_semantics<parallel>, #tpu.dimension_semantics<parallel>, #tpu.dimension_semantics<parallel>], iteration_bounds = array<i64: 2, 1, 1>, scalar_prefetch = 0 : i64, scratch_operands = 0 : i64, tpu.core_type = #tpu.core_type<tc>, window_params = [{transform_indices = @transform_0, window_bounds = array<i64: 1, 18, 16, 16>}, {transform_indices = @transform_1, window_bounds = array<i64: 3, 16, 128>}, {transform_indices = @transform_2, window_bounds = array<i64: 1, 128>}, {transform_indices = @transform_3, window_bounds = array<i64: 1, 256, 128>}]} {
    %c16_i32 = arith.constant 16 : i32
    %0 = arith.muli %arg2, %c16_i32 : i32
    %1 = tpu.assume_multiple %0, 16 : i32
    %c0_i32 = arith.constant 0 : i32
    %2 = arith.addi %1, %c0_i32 : i32
    %c0 = arith.constant 0 : index
    %3 = arith.index_cast %2 : i32 to index
    %c0_0 = arith.constant 0 : index
    %c0_1 = arith.constant 0 : index
    %4 = vector.load %arg3[%c0, %3, %c0_0, %c0_1] : memref<1x18x16x16xbf16, #tpu.memory_space<vmem>>, vector<1x16x16x16xbf16>
    %5 = vector.shape_cast %4 : vector<1x16x16x16xbf16> to vector<16x16x16xbf16>
    %6 = vector.shape_cast %5 : vector<16x16x16xbf16> to vector<256x16xbf16>
    %c1_i32 = arith.constant 1 : i32
    %7 = arith.addi %1, %c1_i32 : i32
    %c0_2 = arith.constant 0 : index
    %8 = arith.index_cast %7 : i32 to index
    %c0_3 = arith.constant 0 : index
    %c0_4 = arith.constant 0 : index
    %9 = vector.load %arg3[%c0_2, %8, %c0_3, %c0_4] : memref<1x18x16x16xbf16, #tpu.memory_space<vmem>>, vector<1x16x16x16xbf16>
    %10 = vector.shape_cast %9 : vector<1x16x16x16xbf16> to vector<16x16x16xbf16>
    %11 = vector.shape_cast %10 : vector<16x16x16xbf16> to vector<256x16xbf16>
    %c2_i32 = arith.constant 2 : i32
    %12 = arith.addi %1, %c2_i32 : i32
    %c0_5 = arith.constant 0 : index
    %13 = arith.index_cast %12 : i32 to index
    %c0_6 = arith.constant 0 : index
    %c0_7 = arith.constant 0 : index
    %14 = vector.load %arg3[%c0_5, %13, %c0_6, %c0_7] : memref<1x18x16x16xbf16, #tpu.memory_space<vmem>>, vector<1x16x16x16xbf16>
    %15 = vector.shape_cast %14 : vector<1x16x16x16xbf16> to vector<16x16x16xbf16>
    %16 = vector.shape_cast %15 : vector<16x16x16xbf16> to vector<256x16xbf16>
    %c0_8 = arith.constant 0 : index
    %c0_9 = arith.constant 0 : index
    %c0_10 = arith.constant 0 : index
    %17 = vector.load %arg4[%c0_8, %c0_9, %c0_10] : memref<3x16x128xbf16, #tpu.memory_space<vmem>>, vector<1x16x128xbf16>
    %18 = vector.shape_cast %17 : vector<1x16x128xbf16> to vector<16x128xbf16>
    %cst = arith.constant dense<0.000000e+00> : vector<256x128xf32>
    %19 = tpu.matmul %6, %18, %cst {dimension_numbers = #tpu.dot_dimension_numbers<[1], [0], [0], [1], [0, 0, 1, 1], [], []>} : vector<256x16xbf16>, vector<16x128xbf16>, vector<256x128xf32> -> vector<256x128xf32>
    %c1 = arith.constant 1 : index
    %c0_11 = arith.constant 0 : index
    %c0_12 = arith.constant 0 : index
    %20 = vector.load %arg4[%c1, %c0_11, %c0_12] : memref<3x16x128xbf16, #tpu.memory_space<vmem>>, vector<1x16x128xbf16>
    %21 = vector.shape_cast %20 : vector<1x16x128xbf16> to vector<16x128xbf16>
    %cst_13 = arith.constant dense<0.000000e+00> : vector<256x128xf32>
    %22 = tpu.matmul %11, %21, %cst_13 {dimension_numbers = #tpu.dot_dimension_numbers<[1], [0], [0], [1], [0, 0, 1, 1], [], []>} : vector<256x16xbf16>, vector<16x128xbf16>, vector<256x128xf32> -> vector<256x128xf32>
    %23 = arith.addf %19, %22 : vector<256x128xf32>
    %c2 = arith.constant 2 : index
    %c0_14 = arith.constant 0 : index
    %c0_15 = arith.constant 0 : index
    %24 = vector.load %arg4[%c2, %c0_14, %c0_15] : memref<3x16x128xbf16, #tpu.memory_space<vmem>>, vector<1x16x128xbf16>
    %25 = vector.shape_cast %24 : vector<1x16x128xbf16> to vector<16x128xbf16>
    %cst_16 = arith.constant dense<0.000000e+00> : vector<256x128xf32>
    %26 = tpu.matmul %16, %25, %cst_16 {dimension_numbers = #tpu.dot_dimension_numbers<[1], [0], [0], [1], [0, 0, 1, 1], [], []>} : vector<256x16xbf16>, vector<16x128xbf16>, vector<256x128xf32> -> vector<256x128xf32>
    %27 = arith.addf %23, %26 : vector<256x128xf32>
    %c0_17 = arith.constant 0 : index
    %c0_18 = arith.constant 0 : index
    %28 = vector.load %arg5[%c0_17, %c0_18] : memref<1x128xf32, #tpu.memory_space<vmem>>, vector<1x128xf32>
    %29 = vector.broadcast %28 : vector<1x128xf32> to vector<256x128xf32>
    %30 = arith.addf %27, %29 : vector<256x128xf32>
    %c0_19 = arith.constant 0 : index
    %c0_20 = arith.constant 0 : index
    %c0_21 = arith.constant 0 : index
    %31 = vector.load %arg6[%c0_19, %c0_20, %c0_21] : memref<1x256x128xf32, #tpu.memory_space<vmem>>, vector<1x256x128xf32>
    %32 = vector.shape_cast %31 : vector<1x256x128xf32> to vector<256x128xf32>
    %33 = vector.shape_cast %30 : vector<256x128xf32> to vector<1x256x128xf32>
    tpu.vector_store %arg6[%c0_19, %c0_20, %c0_21], %33 {strides = array<i32>} : memref<1x256x128xf32, #tpu.memory_space<vmem>>, vector<1x256x128xf32>,
    return
  }
  func.func @transform_0(%arg0: i32, %arg1: i32, %arg2: i32) -> (i32, i32, i32, i32) {
    %c0_i32 = arith.constant 0 : i32
    %c0_i32_0 = arith.constant 0 : i32
    %c0_i32_1 = arith.constant 0 : i32
    %c0_i32_2 = arith.constant 0 : i32
    return %arg0, %c0_i32, %c0_i32_0, %c0_i32_1 : i32, i32, i32, i32
  }
  func.func @transform_1(%arg0: i32, %arg1: i32, %arg2: i32) -> (i32, i32, i32) {
    %c0_i32 = arith.constant 0 : i32
    %c0_i32_0 = arith.constant 0 : i32
    %c0_i32_1 = arith.constant 0 : i32
    return %c0_i32, %c0_i32_0, %arg1 : i32, i32, i32
  }
  func.func @transform_2(%arg0: i32, %arg1: i32, %arg2: i32) -> (i32, i32) {
    %c0_i32 = arith.constant 0 : i32
    %c0_i32_0 = arith.constant 0 : i32
    return %c0_i32, %arg1 : i32, i32
  }
  func.func @transform_3(%arg0: i32, %arg1: i32, %arg2: i32) -> (i32, i32, i32) {
    %c0_i32 = arith.constant 0 : i32
    return %arg0, %arg2, %arg1 : i32, i32, i32
  }
}

</mosaic_0001>

<bundles_post_ra>
// kernel: tpu_custom_call.1
= control target key start
LH: loop header
LB: loop body
LE: loop exit
PB: predicated region body
PF: predicated region fallthrough
CT: control target
= control target key end

     0   :  { %8 = vsyncpa [#allocation3], 0  ;;  %s2373_s0 = inlined_call_operand.vmem [shape: bf16[2,18,16,16], index: 0, kind: input, shape index: {}]   ;;  %s2374_s1 = inlined_call_operand.vmem [shape: bf16[3,16,128], index: 1, kind: input, shape index: {}]   ;;  %s2375_s2 = inlined_call_operand.vmem [shape: f32[1,128], index: 2, kind: input, shape index: {}]   ;;  %s2376_s3 = inlined_call_operand.hbm [shape: f32[2,256,128], index: 3, kind: output, shape index: {}]  }
   0x1   :  { %10 = vsyncpa [#allocation3 + $0x1], 0  ;;  %s2075_s12 = smov 0   ;;  %s2077_s13 = smov 0  }
   0x2   :  { %s2079_s14 = smov 0   ;;  %s2081_s15 = smov 0  }
   0x3   :  { %s2083_s16 = smov 0   ;;  %s2085_s17 = smov 0  }
   0x4 LB: > { %s1461_s18 = sadd.s32 4294967295, %s2050_s17   ;;  %s1462_s19 = sadd.s32 4294967294, %s2050_s17   ;;  %s2050_s17 = sphi %s2085_s17, %s16_s17   ;;  %s2046_s16 = sphi %s2083_s16, %s2383_s16   ;;  %s2042_s15 = sphi %s2081_s15, %s2382_s15   ;;  %s2038_s14 = sphi %s2079_s14, %s2381_s14   ;;  %s2034_s13 = sphi %s2077_s13, %s2380_s13   ;;  %s2030_s12 = sphi %s2075_s12, %s2379_s12  }
   0x5   : > { %s35_s20 = sadd.s32 1, %s2046_s16  ;;  %s124_s21 = sadd.s32 1, %s2038_s14 }
   0x6   : > { %p37_p0 = scmp.ge.s32.totalorder %s35_s20, 2  ;;  %p134_p1 = scmp.ne.s32.totalorder %s2038_s14, %s2034_s13 }
   0x7   : > { %p135_p2 = scmp.eq.s32.totalorder %s1461_s18, 1  ;;  %p140_p3 = scmp.ne.s32.totalorder %s2034_s13, %s2030_s12 }
   0x8   : > { %s2385_s20 = smov (%p37_p0, %s35_s20), 0  ;;  %p141_p5 = scmp.eq.s32.totalorder %s1462_s19, 1 }
   0x9   : > { %p2115_p4 = por %p135_p2, %p134_p1  ;;  %s117_s23 = ssub.s32 %s2046_s16, %s2385_s20 }
   0xa   : > { %p1467_p6 = scmp.ge.s32.totalorder %s2050_s17, 1  ;;  %p122_p7 = scmp.eq.s32.totalorder %s117_s23, 0 }
   0xb   : > { %p2122_p8 = por %p141_p5, %p140_p3  ;;  %p180_p9 = scmp.lt.s32.totalorder %s2050_s17, 3 }
   0xc   : > { %s2128_s25 = scalar_select %p122_p7, %s2038_s14, %s124_s21  }
   0xd   : > { %p181_p10 = pnand %p1467_p6, %p180_p9 }
   0xe   : > { %v1921_v0 = vld [vmem:[%s2374_s1 + $0x8] sm:$0xff] (!%p181_p10)   ;;  %p211_p11 = scmp.lt.s32.totalorder (!%p181_p10), %s2042_s15, 1  ;;  %v1922_v1 = vld [vmem:[%s2374_s1] sm:$0xff] (!%p181_p10)   ;;  %v1925_v2 = vld [vmem:[%s2374_s1 + $0x10] sm:$0xff] (!%p181_p10)   ;;  %vm424_vm0 = vcmask (!%p181_p10), 130048   ;;  %s208_s10 = sand.u32 (!%p181_p10), 1, %s2034_s13  }
   0xf   : > { %184 = sbr.rel (%p181_p10) target bundleno = 351 (0x15f), region = 32  ;;  %1695 = vmatprep.subr.bf16.mxu1 (!%p181_p10), %v1921_v0  ;;  %1729 = vmatprep.subr.bf16.mxu0 (!%p181_p10), %v1922_v1  ;;  %s1468_s11 = sshll.u32 (!%p181_p10), %s208_s10, 8 }
  0x10   : > { %1696 = vmatpush3.bf16.msra.mxu1 (!%p181_p10), %v1921_v0  ;;  %1730 = vmatpush3.bf16.msra.mxu0 (!%p181_p10), %v1922_v1  ;;  %s2252_s21 = scalar_lea.vmem (!%p181_p10), [#allocation2], %s1468_s11  ;;  %s1643_s23 = sshll.u32 (!%p181_p10), %s2042_s15, 12 }
  0x11   : > { %1797 = vmatprep.subr.bf16.mxu1 (!%p181_p10), %v1922_v1  ;;  %1763 = vmatprep.subr.bf16.mxu0 (!%p181_p10), %v1925_v2  ;;  %s1347_s26 = sshll.u32 (!%p181_p10), %s2252_s21, 4  ;;  %s2317_s29 = scalar_lea.hbm (!%p181_p10), %s2376_s3, %s1643_s23  ;;  %s2319_s26 = int_to_ptr.vmem [resolvable:$true] %s1347_s26 }
  0x12   : > { %s2052_s4 = smov (!%p181_p10), [#allocation2]  }
  0x13   : > { %s1976_s5 = sshll.u32 (!%p181_p10), %s2052_s4, 4  ;;  %s1977_s5 = int_to_ptr.vmem [resolvable:$false] %s1976_s5 }
  0x14   : > { %p1979_p1 = scmp.lt.s32.totalorder (!%p181_p10), %s2319_s26, %s1977_s5 }
  0x16   : > { %s212_s30 = scalar_select %p211_p11, %s2042_s15, 1 }
  0x17   : > { %s2327_s15 = scalar_lea.sflag [#allocation3], %s208_s10 }
  0x18   : > { %s1863_s6 = smul.u32 144, %s212_s30  ;;  %s1972_s30 = scalar_lea.vmem %s2319_s26, 4096 }
  0x19   : > { %p1973_p12 = scmp.ne.s32.totalorder %s2319_s26, %s1972_s30 }
  0x1a   : > { %s2144_s9 = scalar_lea.vmem %s2373_s0, %s1863_s6  ;;  %s1978_s6 = scalar_lea.vmem %s1977_s5, 8192 }
  0x1b   : > { %v1923_v3 = vld [vmem:[%s2144_s9 + $0x8] sm:$0xff]   ;;  %v1924_v4 = vld [vmem:[%s2144_s9] sm:$0xff]   ;;  %v1926_v5 = vld [vmem:[%s2144_s9 + $0x10] sm:$0xff]   ;;  %p1974_p13 = pnand %p1973_p12, %p2115_p4  ;;  %p1980_p2 = scmp.lt.s32.totalorder %s1978_s6, %s1972_s30 }
  0x1c   : > { %1697 = vmatprep.mubr.msk.bf16.mxu1 %vm424_vm0, %v1923_v3  ;;  %1731 = vmatprep.mubr.msk.bf16.mxu0 %vm424_vm0, %v1924_v4  ;;  %v1927_v6 = vld [vmem:[%s2144_s9 + $0x8] sm:$0xff]   ;;  %v1928_v7 = vld [vmem:[%s2144_s9 + $0x18] sm:$0xff]   ;;  %v1929_v8 = vld [vmem:[%s2144_s9 + $0x10] sm:$0xff]  }
  0x1d   : > { %1698 = vmatmul.mubr.msk.bf16.vlgmr.msra.gmra.mrb[0].mxu1 %vm424_vm0, %v1926_v5  ;;  %1732 = vmatmul.mubr.msk.bf16.vlgmr.msra.gmra.mrb[0].mxu0 %vm424_vm0, %v1927_v6  ;;  %v1930_v9 = vld [vmem:[%s2144_s9 + $0x20] sm:$0xff]   ;;  %v1931_v10 = vld [vmem:[%s2144_s9 + $0x18] sm:$0xff]   ;;  %v1932_v11 = vld [vmem:[%s2144_s9 + $0x28] sm:$0xff]   ;;  %p1975_p0 = pneg %p1974_p13  ;;  %p1981_p3 = por %p1980_p2, %p1979_p1 }
  0x1e   : > { %1798 = vmatpush3.bf16.msra.mxu1 %v1922_v1  ;;  %1764 = vmatpush3.bf16.msra.mxu0 %v1925_v2  ;;  %v1933_v12 = vld [vmem:[%s2144_s9 + $0x20] sm:$0xff]   ;;  %v1934_v13 = vld [vmem:[%s2144_s9 + $0x30] sm:$0xff]   ;;  %v1935_v14 = vld [vmem:[%s2144_s9 + $0x28] sm:$0xff]  }
  0x1f   : > { %1701 = vmatprep.mubr.msk.bf16.mxu1 %vm424_vm0, %v1928_v7  ;;  %1735 = vmatprep.mubr.msk.bf16.mxu0 %vm424_vm0, %v1929_v8  ;;  %v1936_v15 = vld [vmem:[%s2144_s9 + $0x38] sm:$0xff]   ;;  %v1937_v16 = vld [vmem:[%s2144_s9 + $0x30] sm:$0xff]   ;;  %v1938_v17 = vld [vmem:[%s2144_s9 + $0x40] sm:$0xff]   ;;  %p1982_p5 = pnand %p1981_p3, %p1975_p0 }
  0x20   : > { %v1939_v18 = vld [vmem:[%s2144_s9 + $0x38] sm:$0xff]   ;;  %v1940_v19 = vld [vmem:[%s2144_s9 + $0x48] sm:$0xff]   ;;  %v1941_v20 = vld [vmem:[%s2144_s9 + $0x10] sm:$0xff]  }
  0x21   : > { %v1942_v21 = vld [vmem:[%s2144_s9 + $0x50] sm:$0xff]   ;;  %v1943_v22 = vld [vmem:[%s2144_s9 + $0x18] sm:$0xff]   ;;  %v1945_v24 = vld [vmem:[%s2144_s9 + $0x20] sm:$0xff]  }
  0x22   : > { %v1944_v23 = vld [vmem:[%s2144_s9 + $0x58] sm:$0xff]   ;;  %v1946_v25 = vld [vmem:[%s2144_s9 + $0x60] sm:$0xff]   ;;  %v1947_v26 = vld [vmem:[%s2144_s9 + $0x28] sm:$0xff]  }
  0x23   : > { %v1948_v27 = vld [vmem:[%s2144_s9 + $0x68] sm:$0xff]   ;;  %v1949_v28 = vld [vmem:[%s2144_s9 + $0x30] sm:$0xff]   ;;  %v1951_v30 = vld [vmem:[%s2144_s9 + $0x38] sm:$0xff]  }
  0x24   : > { %v1950_v29 = vld [vmem:[%s2144_s9 + $0x70] sm:$0xff]   ;;  %v1952_v31 = vld [vmem:[%s2144_s9 + $0x78] sm:$0xff]   ;;  %v1953_v32 = vld [vmem:[%s2144_s9 + $0x40] sm:$0xff]  }
  0x25   : > { %1702 = vmatmul.mubr.msk.bf16.gmra.mrb[4].mxu1 %vm424_vm0, %v1930_v9  ;;  %1736 = vmatmul.mubr.msk.bf16.gmra.mrb[4].mxu0 %vm424_vm0, %v1931_v10  ;;  %v1954_v33 = vld [vmem:[%s2144_s9 + $0x80] sm:$0xff]   ;;  %v1955_v34 = vld [vmem:[%s2144_s9 + $0x48] sm:$0xff]   ;;  %v1957_v36 = vld [vmem:[%s2144_s9 + $0x50] sm:$0xff]  }
  0x26   : > { %1705 = vmatprep.mubr.msk.bf16.mxu1 %vm424_vm0, %v1932_v11  ;;  %1739 = vmatprep.mubr.msk.bf16.mxu0 %vm424_vm0, %v1933_v12  ;;  %v1956_v35 = vld [vmem:[%s2144_s9 + $0x40] sm:$0xff]   ;;  %v1958_v37 = vld [vmem:[%s2144_s9 + $0x48] sm:$0xff]   ;;  %v1959_v38 = vld [vmem:[%s2144_s9 + $0x58] sm:$0xff]  }
  0x27   : > { %v1960_v39 = vld [vmem:[%s2144_s9 + $0x50] sm:$0xff]   ;;  %v1961_v40 = vld [vmem:[%s2144_s9 + $0x60] sm:$0xff]   ;;  %v1962_v41 = vld [vmem:[%s2144_s9 + $0x58] sm:$0xff]  }
  0x28   : > { %v1963_v42 = vld [vmem:[%s2144_s9 + $0x68] sm:$0xff]   ;;  %v1964_v43 = vld [vmem:[%s2144_s9 + $0x60] sm:$0xff]   ;;  %v1965_v44 = vld [vmem:[%s2144_s9 + $0x70] sm:$0xff]  }
  0x29   : > { %v1966_v45 = vld [vmem:[%s2144_s9 + $0x68] sm:$0xff]   ;;  %v1967_v46 = vld [vmem:[%s2144_s9 + $0x78] sm:$0xff]   ;;  %v1968_v47 = vld [vmem:[%s2144_s9 + $0x70] sm:$0xff]  }
  0x2a   : > { %v1969_v48 = vld [vmem:[%s2144_s9 + $0x80] sm:$0xff]   ;;  %v1970_v49 = vld [vmem:[%s2144_s9 + $0x78] sm:$0xff]   ;;  %v1971_v50 = vld [vmem:[%s2144_s9 + $0x88] sm:$0xff]  }
  0x2b   : > { %v2248_v4 = vld [vmem:[%s2375_s2] ss:$0 sm:$0xff] }
  0x2d   : > { %1706 = vmatmul.mubr.msk.bf16.gmra.mrb[8].mxu1 %vm424_vm0, %v1934_v13  ;;  %1740 = vmatmul.mubr.msk.bf16.gmra.mrb[8].mxu0 %vm424_vm0, %v1935_v14 }
  0x2e   : > { %1709 = vmatprep.mubr.msk.bf16.mxu1 %vm424_vm0, %v1936_v15  ;;  %1743 = vmatprep.mubr.msk.bf16.mxu0 %vm424_vm0, %v1937_v16 }
  0x35   : > { %1710 = vmatmul.mubr.msk.bf16.gmra.mrb[12].mxu1 %vm424_vm0, %v1938_v17  ;;  %1744 = vmatmul.mubr.msk.bf16.gmra.mrb[12].mxu0 %vm424_vm0, %v1939_v18 }
  0x36   : > { %1713 = vmatprep.mubr.msk.bf16.mxu1 %vm424_vm0, %v1940_v19  ;;  %1765 = vmatprep.mubr.msk.bf16.mxu0 %vm424_vm0, %v1941_v20 }
  0x3d   : > { %1714 = vmatmul.mubr.msk.bf16.gmra.mrb[16].mxu1 %vm424_vm0, %v1942_v21  ;;  %1766 = vmatmul.mubr.msk.bf16.vlgmr.msra.gmra.mrb[0].mxu0 %vm424_vm0, %v1943_v22 }
  0x3e   : > { %1717 = vmatprep.mubr.msk.bf16.mxu1 %vm424_vm0, %v1944_v23  ;;  %1769 = vmatprep.mubr.msk.bf16.mxu0 %vm424_vm0, %v1945_v24 }
  0x45   : > { %1718 = vmatmul.mubr.msk.bf16.gmra.mrb[20].mxu1 %vm424_vm0, %v1946_v25  ;;  %1770 = vmatmul.mubr.msk.bf16.gmra.mrb[4].mxu0 %vm424_vm0, %v1947_v26 }
  0x46   : > { %1721 = vmatprep.mubr.msk.bf16.mxu1 %vm424_vm0, %v1948_v27  ;;  %1773 = vmatprep.mubr.msk.bf16.mxu0 %vm424_vm0, %v1949_v28 }
  0x4d   : > { %1722 = vmatmul.mubr.msk.bf16.gmra.mrb[24].mxu1 %vm424_vm0, %v1950_v29  ;;  %1774 = vmatmul.mubr.msk.bf16.gmra.mrb[8].mxu0 %vm424_vm0, %v1951_v30 }
  0x4e   : > { %1725 = vmatprep.mubr.msk.bf16.mxu1 %vm424_vm0, %v1952_v31  ;;  %1777 = vmatprep.mubr.msk.bf16.mxu0 %vm424_vm0, %v1953_v32 }
  0x55   : > { %1726 = vmatmul.mubr.msk.bf16.gmra.mrb[28].mxu1 %vm424_vm0, %v1954_v33  ;;  %1778 = vmatmul.mubr.msk.bf16.gmra.mrb[12].mxu0 %vm424_vm0, %v1955_v34 }
  0x56   : > { %1747 = vmatprep.mubr.msk.bf16.mxu1 %vm424_vm0, %v1956_v35  ;;  %1781 = vmatprep.mubr.msk.bf16.mxu0 %vm424_vm0, %v1957_v36 }
  0x5d   : > { %1748 = vmatmul.mubr.msk.bf16.vlgmr.msra.gmra.mrb[16].mxu1 %vm424_vm0, %v1958_v37  ;;  %1782 = vmatmul.mubr.msk.bf16.gmra.mrb[16].mxu0 %vm424_vm0, %v1959_v38 }
  0x5e   : > { %1751 = vmatprep.mubr.msk.bf16.mxu1 %vm424_vm0, %v1960_v39  ;;  %1785 = vmatprep.mubr.msk.bf16.mxu0 %vm424_vm0, %v1961_v40 }
  0x65   : > { %1752 = vmatmul.mubr.msk.bf16.gmra.mrb[20].mxu1 %vm424_vm0, %v1962_v41  ;;  %1786 = vmatmul.mubr.msk.bf16.gmra.mrb[20].mxu0 %vm424_vm0, %v1963_v42 }
  0x66   : > { %1755 = vmatprep.mubr.msk.bf16.mxu1 %vm424_vm0, %v1964_v43  ;;  %1789 = vmatprep.mubr.msk.bf16.mxu0 %vm424_vm0, %v1965_v44 }
  0x6d   : > { %1756 = vmatmul.mubr.msk.bf16.gmra.mrb[24].mxu1 %vm424_vm0, %v1966_v45  ;;  %1790 = vmatmul.mubr.msk.bf16.gmra.mrb[24].mxu0 %vm424_vm0, %v1967_v46 }
  0x6e   : > { %1759 = vmatprep.mubr.msk.bf16.mxu1 %vm424_vm0, %v1968_v47  ;;  %1793 = vmatprep.mubr.msk.bf16.mxu0 %vm424_vm0, %v1969_v48 }
  0x75   : > { %1760 = vmatmul.mubr.msk.bf16.gmra.mrb[28].mxu1 %vm424_vm0, %v1970_v49  ;;  %1794 = vmatmul.mubr.msk.bf16.gmra.mrb[28].mxu0 %vm424_vm0, %v1971_v50 }
  0xf0   : > { %v1699_v51 = vpop.f32.mrb[0].mxu1 }
  0xf1   : > { %v507_v52 = vpop.f32.mrb[1].mxu1 }
  0xf2   : > { %v1700_v53 = vpop.f32.mrb[2].mxu1 }
  0xf3   : > { %v510_v54 = vpop.f32.mrb[3].mxu1 }
  0xf8   : > { %v1703_v55 = vpop.f32.mrb[4].mxu1 }
  0xf9   : > { %v523_v56 = vpop.f32.mrb[5].mxu1 }
  0xfa   : > { %v1704_v57 = vpop.f32.mrb[6].mxu1 }
  0xfb   : > { %v526_v58 = vpop.f32.mrb[7].mxu1 }
 0x100   : > { %v1707_v59 = vpop.f32.mrb[8].mxu1 }
 0x101   : > { %v539_v60 = vpop.f32.mrb[9].mxu1 }
 0x102   : > { %v1708_v61 = vpop.f32.mrb[10].mxu1 }
 0x103   : > { %v542_v62 = vpop.f32.mrb[11].mxu1 }
 0x108   : > { %v1711_v63 = vpop.f32.mrb[12].mxu1 }
 0x109   : > { %v555_v0 = vpop.f32.mrb[13].mxu1 }
 0x10a   : > { %v1712_v1 = vpop.f32.mrb[14].mxu1 }
 0x10b   : > { %v558_v2 = vpop.f32.mrb[15].mxu1 }
 0x110   : > { %v1767_v3 = vpop.f32.mrb[0].mxu0 }
 0x111   : > { %v1799_v5 = vadd.f32 %v1767_v3, %v1699_v51  ;;  %v1100_v6 = vpop.f32.mrb[1].mxu0 }
 0x112   : > { %v1800_v7 = vadd.f32 %v1100_v6, %v507_v52  ;;  %v1768_v8 = vpop.f32.mrb[2].mxu0 }
 0x113   : > { %v1268_v9 = vadd.f32 %v1799_v5, %v2248_v4  ;;  %v1801_v10 = vadd.f32 %v1768_v8, %v1700_v53  ;;  %v1103_v11 = vpop.f32.mrb[3].mxu0 }
 0x114   : > { %v1266_v12 = vadd.f32 %v1800_v7, %v2248_v4  ;;  %v1802_v13 = vadd.f32 %v1103_v11, %v510_v54 }
 0x115   : > { %1300 = vst [vmem:[%s2252_s21 + $0x10] sm:$0xff] %v1268_v9  ;;  %v1269_v14 = vadd.f32 %v1801_v10, %v2248_v4 }
 0x116   : > { %1298 = vst [vmem:[%s2252_s21] sm:$0xff] %v1266_v12  ;;  %v1267_v15 = vadd.f32 %v1802_v13, %v2248_v4 }
 0x117   : > { %1301 = vst [vmem:[%s2252_s21 + $0x18] sm:$0xff] %v1269_v14 }
 0x118   : > { %1299 = vst [vmem:[%s2252_s21 + $0x8] sm:$0xff] %v1267_v15  ;;  %v1771_v16 = vpop.f32.mrb[4].mxu0 }
 0x119   : > { %v1803_v17 = vadd.f32 %v1771_v16, %v1703_v55  ;;  %v1116_v18 = vpop.f32.mrb[5].mxu0 }
 0x11a   : > { %v1804_v19 = vadd.f32 %v1116_v18, %v523_v56  ;;  %v1772_v20 = vpop.f32.mrb[6].mxu0 }
 0x11b   : > { %v1272_v21 = vadd.f32 %v1803_v17, %v2248_v4  ;;  %v1805_v22 = vadd.f32 %v1772_v20, %v1704_v57  ;;  %v1119_v23 = vpop.f32.mrb[7].mxu0 }
 0x11c   : > { %v1270_v24 = vadd.f32 %v1804_v19, %v2248_v4  ;;  %v1806_v25 = vadd.f32 %v1119_v23, %v526_v58 }
 0x11d   : > { %1304 = vst [vmem:[%s2252_s21 + $0x30] sm:$0xff] %v1272_v21  ;;  %v1273_v26 = vadd.f32 %v1805_v22, %v2248_v4 }
 0x11e   : > { %1302 = vst [vmem:[%s2252_s21 + $0x20] sm:$0xff] %v1270_v24  ;;  %v1271_v27 = vadd.f32 %v1806_v25, %v2248_v4 }
 0x11f   : > { %1305 = vst [vmem:[%s2252_s21 + $0x38] sm:$0xff] %v1273_v26 }
 0x120   : > { %1303 = vst [vmem:[%s2252_s21 + $0x28] sm:$0xff] %v1271_v27  ;;  %v1775_v28 = vpop.f32.mrb[8].mxu0 }
 0x121   : > { %v1807_v29 = vadd.f32 %v1775_v28, %v1707_v59  ;;  %v1132_v30 = vpop.f32.mrb[9].mxu0 }
 0x122   : > { %v1808_v31 = vadd.f32 %v1132_v30, %v539_v60  ;;  %v1776_v32 = vpop.f32.mrb[10].mxu0 }
 0x123   : > { %v1276_v33 = vadd.f32 %v1807_v29, %v2248_v4  ;;  %v1809_v34 = vadd.f32 %v1776_v32, %v1708_v61  ;;  %v1135_v35 = vpop.f32.mrb[11].mxu0 }
 0x124   : > { %v1274_v36 = vadd.f32 %v1808_v31, %v2248_v4  ;;  %v1810_v37 = vadd.f32 %v1135_v35, %v542_v62 }
 0x125   : > { %1308 = vst [vmem:[%s2252_s21 + $0x50] sm:$0xff] %v1276_v33  ;;  %v1277_v38 = vadd.f32 %v1809_v34, %v2248_v4 }
 0x126   : > { %1306 = vst [vmem:[%s2252_s21 + $0x40] sm:$0xff] %v1274_v36  ;;  %v1275_v39 = vadd.f32 %v1810_v37, %v2248_v4 }
 0x127   : > { %1309 = vst [vmem:[%s2252_s21 + $0x58] sm:$0xff] %v1277_v38 }
 0x128   : > { %1307 = vst [vmem:[%s2252_s21 + $0x48] sm:$0xff] %v1275_v39  ;;  %v1779_v40 = vpop.f32.mrb[12].mxu0 }
 0x129   : > { %v1811_v41 = vadd.f32 %v1779_v40, %v1711_v63  ;;  %v1148_v42 = vpop.f32.mrb[13].mxu0 }
 0x12a   : > { %v1812_v43 = vadd.f32 %v1148_v42, %v555_v0  ;;  %v1780_v44 = vpop.f32.mrb[14].mxu0 }
 0x12b   : > { %v1280_v45 = vadd.f32 %v1811_v41, %v2248_v4  ;;  %v1813_v46 = vadd.f32 %v1780_v44, %v1712_v1  ;;  %v1151_v47 = vpop.f32.mrb[15].mxu0 }
 0x12c   : > { %v1278_v48 = vadd.f32 %v1812_v43, %v2248_v4  ;;  %v1814_v49 = vadd.f32 %v1151_v47, %v558_v2 }
 0x12d   : > { %1312 = vst [vmem:[%s2252_s21 + $0x70] sm:$0xff] %v1280_v45  ;;  %v1281_v50 = vadd.f32 %v1813_v46, %v2248_v4 }
 0x12e   : > { %1310 = vst [vmem:[%s2252_s21 + $0x60] sm:$0xff] %v1278_v48  ;;  %v1279_v51 = vadd.f32 %v1814_v49, %v2248_v4 }
 0x12f   : > { %1313 = vst [vmem:[%s2252_s21 + $0x78] sm:$0xff] %v1281_v50 }
 0x130   : > { %v1749_v52 = vpop.f32.mrb[16].mxu1  ;;  %1311 = vst [vmem:[%s2252_s21 + $0x68] sm:$0xff] %v1279_v51  ;;  %v1783_v53 = vpop.f32.mrb[16].mxu0 }
 0x131   : > { %v866_v54 = vpop.f32.mrb[17].mxu1  ;;  %v1815_v55 = vadd.f32 %v1783_v53, %v1749_v52  ;;  %v1164_v56 = vpop.f32.mrb[17].mxu0 }
 0x132   : > { %v1750_v57 = vpop.f32.mrb[18].mxu1  ;;  %v1816_v58 = vadd.f32 %v1164_v56, %v866_v54  ;;  %v1784_v59 = vpop.f32.mrb[18].mxu0 }
 0x133   : > { %v869_v60 = vpop.f32.mrb[19].mxu1  ;;  %v1284_v61 = vadd.f32 %v1815_v55, %v2248_v4  ;;  %v1817_v62 = vadd.f32 %v1784_v59, %v1750_v57  ;;  %v1167_v63 = vpop.f32.mrb[19].mxu0 }
 0x134   : > { %v1282_v0 = vadd.f32 %v1816_v58, %v2248_v4  ;;  %v1818_v1 = vadd.f32 %v1167_v63, %v869_v60 }
 0x135   : > { %1316 = vst [vmem:[%s2252_s21 + $0x90] sm:$0xff] %v1284_v61  ;;  %v1285_v2 = vadd.f32 %v1817_v62, %v2248_v4 }
 0x136   : > { %1314 = vst [vmem:[%s2252_s21 + $0x80] sm:$0xff] %v1282_v0  ;;  %v1283_v3 = vadd.f32 %v1818_v1, %v2248_v4 }
 0x137   : > { %1317 = vst [vmem:[%s2252_s21 + $0x98] sm:$0xff] %v1285_v2 }
 0x138   : > { %v1753_v5 = vpop.f32.mrb[20].mxu1  ;;  %1315 = vst [vmem:[%s2252_s21 + $0x88] sm:$0xff] %v1283_v3  ;;  %v1787_v6 = vpop.f32.mrb[20].mxu0 }
 0x139   : > { %v882_v7 = vpop.f32.mrb[21].mxu1  ;;  %v1819_v8 = vadd.f32 %v1787_v6, %v1753_v5  ;;  %v1180_v9 = vpop.f32.mrb[21].mxu0 }
 0x13a   : > { %v1754_v10 = vpop.f32.mrb[22].mxu1  ;;  %v1820_v11 = vadd.f32 %v1180_v9, %v882_v7  ;;  %v1788_v12 = vpop.f32.mrb[22].mxu0 }
 0x13b   : > { %v885_v13 = vpop.f32.mrb[23].mxu1  ;;  %v1288_v14 = vadd.f32 %v1819_v8, %v2248_v4  ;;  %v1821_v15 = vadd.f32 %v1788_v12, %v1754_v10  ;;  %v1183_v16 = vpop.f32.mrb[23].mxu0 }
 0x13c   : > { %v1286_v17 = vadd.f32 %v1820_v11, %v2248_v4  ;;  %v1822_v18 = vadd.f32 %v1183_v16, %v885_v13 }
 0x13d   : > { %1320 = vst [vmem:[%s2252_s21 + $0xb0] sm:$0xff] %v1288_v14  ;;  %v1289_v19 = vadd.f32 %v1821_v15, %v2248_v4 }
 0x13e   : > { %1318 = vst [vmem:[%s2252_s21 + $0xa0] sm:$0xff] %v1286_v17  ;;  %v1287_v20 = vadd.f32 %v1822_v18, %v2248_v4 }
 0x13f   : > { %1321 = vst [vmem:[%s2252_s21 + $0xb8] sm:$0xff] %v1289_v19 }
 0x140   : > { %v1757_v21 = vpop.f32.mrb[24].mxu1  ;;  %1319 = vst [vmem:[%s2252_s21 + $0xa8] sm:$0xff] %v1287_v20  ;;  %v1791_v22 = vpop.f32.mrb[24].mxu0 }
 0x141   : > { %v898_v23 = vpop.f32.mrb[25].mxu1  ;;  %v1823_v24 = vadd.f32 %v1791_v22, %v1757_v21  ;;  %v1196_v25 = vpop.f32.mrb[25].mxu0 }
 0x142   : > { %v1758_v26 = vpop.f32.mrb[26].mxu1  ;;  %v1824_v27 = vadd.f32 %v1196_v25, %v898_v23  ;;  %v1792_v28 = vpop.f32.mrb[26].mxu0 }
 0x143   : > { %v901_v29 = vpop.f32.mrb[27].mxu1  ;;  %v1292_v30 = vadd.f32 %v1823_v24, %v2248_v4  ;;  %v1825_v31 = vadd.f32 %v1792_v28, %v1758_v26  ;;  %v1199_v32 = vpop.f32.mrb[27].mxu0 }
 0x144   : > { %v1290_v33 = vadd.f32 %v1824_v27, %v2248_v4  ;;  %v1826_v34 = vadd.f32 %v1199_v32, %v901_v29 }
 0x145   : > { %1324 = vst [vmem:[%s2252_s21 + $0xd0] sm:$0xff] %v1292_v30  ;;  %v1293_v35 = vadd.f32 %v1825_v31, %v2248_v4 }
 0x146   : > { %1322 = vst [vmem:[%s2252_s21 + $0xc0] sm:$0xff] %v1290_v33  ;;  %v1291_v36 = vadd.f32 %v1826_v34, %v2248_v4 }
 0x147   : > { %1325 = vst [vmem:[%s2252_s21 + $0xd8] sm:$0xff] %v1293_v35 }
 0x148   : > { %v1761_v37 = vpop.f32.mrb[28].mxu1  ;;  %1323 = vst [vmem:[%s2252_s21 + $0xc8] sm:$0xff] %v1291_v36  ;;  %v1795_v38 = vpop.f32.mrb[28].mxu0 }
 0x149   : > { %v914_v39 = vpop.f32.mrb[29].mxu1  ;;  %v1827_v40 = vadd.f32 %v1795_v38, %v1761_v37  ;;  %v1212_v41 = vpop.f32.mrb[29].mxu0 }
 0x14a   : > { %v1762_v42 = vpop.f32.mrb[30].mxu1  ;;  %v1828_v43 = vadd.f32 %v1212_v41, %v914_v39  ;;  %v1796_v44 = vpop.f32.mrb[30].mxu0 }
 0x14b   : > { %v917_v45 = vpop.f32.mrb[31].mxu1  ;;  %v1296_v46 = vadd.f32 %v1827_v40, %v2248_v4  ;;  %v1829_v47 = vadd.f32 %v1796_v44, %v1762_v42  ;;  %v1215_v48 = vpop.f32.mrb[31].mxu0 }
 0x14c   : > { %v1294_v49 = vadd.f32 %v1828_v43, %v2248_v4  ;;  %v1830_v50 = vadd.f32 %v1215_v48, %v917_v45 }
 0x14d   : > { %1328 = vst [vmem:[%s2252_s21 + $0xf0] sm:$0xff] %v1296_v46  ;;  %v1297_v51 = vadd.f32 %v1829_v47, %v2248_v4 }
 0x14e   : > { %1326 = vst [vmem:[%s2252_s21 + $0xe0] sm:$0xff] %v1294_v49  ;;  %v1295_v52 = vadd.f32 %v1830_v50, %v2248_v4 }
 0x14f   : > { %1329 = vst [vmem:[%s2252_s21 + $0xf8] sm:$0xff] %v1297_v51 }
 0x150   : > { %1327 = vst [vmem:[%s2252_s21 + $0xe8] sm:$0xff] %v1295_v52 }
 0x151   : > { %1985 = shalt.err (!%p1982_p5)
}
 0x152   : > { %s1986_s7 = scalar_lea.hbm %s2317_s29, 4096  ;;  %s1990_s10 = scalar_lea.hbm %s2376_s3, 8192 }
 0x153   : > { %p1987_p6 = scmp.ne.s32.totalorder %s2317_s29, %s1986_s7  ;;  %p1991_p10 = scmp.lt.u32.totalorder %s2317_s29, %s2376_s3 }
 0x154   : > { %p1992_p11 = scmp.lt.u32.totalorder %s1990_s10, %s1986_s7  ;;  %p1994_p13 = scmp.lt.u32.totalorder %s1986_s7, %s2317_s29 }
 0x155   : > { %p1988_p7 = pnand %p1987_p6, %p2115_p4 }
 0x156   : > { %p1993_p12 = por %p1992_p11, %p1991_p10 }
 0x157   : > { %p1989_p9 = pneg %p1988_p7 }
 0x158   : > { %p1995_p0 = por %p1994_p13, %p1993_p12 }
 0x15a   : > { %p1996_p1 = pnand %p1995_p0, %p1989_p9 }
 0x15c   : > { %1999 = shalt.err (!%p1996_p1)
}
 0x15d   : > { %s2053_s19 = smov 128   ;;  %s2054_s21 = smov 8  }
 0x15e   : > { %1864 = dma.vmem_to_hbm [thread:$0]  (%p2115_p4), %s2319_s26, 4096, %s2317_s29, %s2327_s15, %s2053_s19, %s2053_s19, %s2054_s21  }
 0x15f PF: > { %p1870_p2 = scmp.ge.s32.totalorder %s2050_s17, 2  ;;  %s1362_s23 = sand.u32 1, %s2030_s12  }
 0x160   : > { %s1363_s27 = scalar_lea.sflag [#allocation3], %s1362_s23 }
 0x161   : > { %p1867_p3 = pnand %p1870_p2, %p2122_p8 }
 0x163   : > { %2025 = dma.done.wait (!%p1867_p3), %s1363_s27, 4096  }
 0x164   : > { %2027 = vsyncadd (!%p1867_p3), %s1363_s27, 4294963200  ;;  %s16_s17 = sadd.s32 1, %s2050_s17   ;;  %s2379_s12 = smov %s2034_s13 }
 0x165   : > { %p13_p5 = scmp.ge.s32.totalorder %s16_s17, 4   ;;  %s2380_s13 = smov %s2038_s14 }
 0x166   : > { %s2381_s14 = smov %s2128_s25  ;;  %s2382_s15 = smov %s2046_s16 }
 0x167   : > { %s2383_s16 = smov %s2385_s20  ;;  %15 = sbr.rel (!%p13_p5) target bundleno = 4 (0x4), region = 78 }
 0x16e   :  { %1368 = vsyncpa [#allocation3], 1 }
 0x16f   :  { %1370 = vsyncpa [#allocation3 + $0x1], 1 }

</bundles_post_ra>
